<compile_context>
chip_gen: v6e
topology: v6e:2x2x1
jax: 0.10.0
libtpu: 0.0.40
codegen_flags: <defaults>
</compile_context>

<pallas_src>
import jax
import jax.numpy as jnp
from jax.experimental import pallas as pl
from jax.experimental.pallas import tpu as pltpu


def _softplus(x):
    # numerically-stable softplus (matches torch.nn.Softplus)
    return jnp.maximum(x, 0.0) + jnp.log1p(jnp.exp(-jnp.abs(x)))


def _fused_stack_kernel(d_ref, eps_ref, w1_ref, b1_ref, w2_ref, b2_ref,
                        wms_ref, bms_ref, out_ref, z_carry, e_acc):
    """One grid step == one EncodeBlock layer. z_carry persists across layers."""
    C = z_carry.shape[-1]
    layer = pl.program_id(0)

    # e_d = relu(d @ W1 + b1)
    e_acc[...] = jnp.maximum(
        jnp.dot(d_ref[0], w1_ref[0], preferred_element_type=jnp.float32)
        + b1_ref[0], 0.0)

    # e_z = relu(z @ W2 + b2), only for layers > 0 (first block has no z input).
    # NOTE: ReLU is applied to each term separately (matches the module exactly).
    @pl.when(layer > 0)
    def _():
        e_acc[...] += jnp.maximum(
            jnp.dot(z_carry[...], w2_ref[0], preferred_element_type=jnp.float32)
            + b2_ref[0], 0.0)

    e = e_acc[...]

    # Single matmul for [mean | pre_std]: Wm and W3 concatenated along out dim.
    ms = jnp.dot(e, wms_ref[0], preferred_element_type=jnp.float32) + bms_ref[0]
    mean = ms[:, :C]
    std = jnp.clip(_softplus(ms[:, C:]), 0.001, 5.0)

    z = eps_ref[0] * std + mean
    z_carry[...] = z                                   # stays in VMEM for next layer

    # Lane-dense output slab: [z | mean | std] -> one full-width store per layer.
    out_ref[0] = jnp.concatenate([z, mean, std], axis=-1)


def generative_stack_pallas(d_all, eps_all, params):
    """d_all/eps_all: [L, M, C] f32. Returns [L, M, 3C] = [z | mean | std]."""
    L, M, C = d_all.shape
    C2 = params["wms"].shape[-1]          # 2C
    C3 = C2 + C                           # 3C

    def spec(rows, cols):
        return pl.BlockSpec((1, rows, cols), lambda l: (l, 0, 0))

    return pl.pallas_call(
        _fused_stack_kernel,
        grid=(L,),
        in_specs=[
            spec(M, C),      # d      [L, M, C]
            spec(M, C),      # eps    [L, M, C]
            spec(C, C),      # W1     [L, C, C]
            spec(1, C),      # b1     [L, 1, C]
            spec(C, C),      # W2     [L, C, C]   (layer 0 row unused)
            spec(1, C),      # b2     [L, 1, C]
            spec(C, C2),     # Wm|W3  [L, C, 2C]
            spec(1, C2),     # bm|b3  [L, 1, 2C]
        ],
        out_specs=spec(M, C3),
        out_shape=jax.ShapeDtypeStruct((L, M, C3), jnp.float32),
        scratch_shapes=[
            pltpu.VMEM((M, C), jnp.float32),   # z carried across layers
            pltpu.VMEM((M, C), jnp.float32),   # e accumulator
        ],
        compiler_params=pltpu.CompilerParams(
            # layer axis is sequential (z dependence) -> must be "arbitrary"
            dimension_semantics=("arbitrary",)),
    )(d_all, eps_all, params["w1"], params["b1"], params["w2"], params["b2"],
      params["wms"], params["bms"])


def init_params(key, num_channels):
    """Stacked EncodeBlock params matching EncodeBlock.init_weights():
    uniform(-0.01, 0.01) weights, zero biases. Weights stored pre-transposed
    [in, out]; Wm and W3 pre-concatenated to [C, 2C]. Requires uniform channels
    (the PyTorch forward's z chaining implicitly requires this)."""
    L = len(num_channels)
    C = num_channels[0]
    assert all(c == C for c in num_channels), "forward requires uniform channels"
    initrange = 0.01
    w1, w2, wm, w3 = [], [], [], []
    for i in range(L):
        key, k1, k2, k3, km = jax.random.split(key, 5)
        w1.append(jax.random.uniform(k1, (C, C), jnp.float32, -initrange, initrange))
        wm.append(jax.random.uniform(km, (C, C), jnp.float32, -initrange, initrange))
        w3.append(jax.random.uniform(k3, (C, C), jnp.float32, -initrange, initrange))
        if i == 0:
            w2.append(jnp.zeros((C, C), jnp.float32))   # placeholder, never used
        else:
            w2.append(jax.random.uniform(k2, (C, C), jnp.float32,
                                         -initrange, initrange))
    return {
        "w1": jnp.stack(w1),                                     # [L, C, C]
        "b1": jnp.zeros((L, 1, C), jnp.float32),
        "w2": jnp.stack(w2),                                     # [L, C, C]
        "b2": jnp.zeros((L, 1, C), jnp.float32),
        "wms": jnp.concatenate([jnp.stack(wm), jnp.stack(w3)], axis=-1),  # [L, C, 2C]
        "bms": jnp.zeros((L, 1, 2 * C), jnp.float32),
    }


@jax.jit
def generative_network_forward(final_d, d, params, sample_key):
    """final_d: [B, C, T]; d: [L-1, B, C, T] (PyTorch NCW layout).
    Returns (all_z, all_mean, all_std), each [L, B, T, C]."""
    L = params["w1"].shape[0]
    B, C, T = final_d.shape
    M = B * T

    # One transpose/reshape for the whole stack: [L,B,C,T] -> [L,B,T,C] -> [L,M,C]
    d_all = jnp.concatenate([final_d[None], d], axis=0)
    d_all = jnp.transpose(d_all, (0, 1, 3, 2)).reshape(L, M, C)

    # One normal draw for all layers.
    eps_all = jax.random.normal(sample_key, (L, M, C), dtype=jnp.float32)

    out = generative_stack_pallas(d_all, eps_all, params)        # [L, M, 3C]
    out = out.reshape(L, B, T, 3 * C)
    all_z = out[..., 0:C]
    all_mean = out[..., C:2 * C]
    all_std = out[..., 2 * C:3 * C]
    return all_z, all_mean, all_std


if __name__ == "__main__":
    # Small, module-consistent shapes: batch=2, channels=32, seq len=8, 3 levels.
    num_channels = [32, 32, 32]
    B, C, T = 2, 32, 8
    L = len(num_channels)

    root = jax.random.PRNGKey(0)
    k_par, k_fd, k_d, k_samp = jax.random.split(root, 4)

    params = init_params(k_par, num_channels)
    final_d = jax.random.normal(k_fd, (B, C, T), dtype=jnp.float32)
    d = jax.random.normal(k_d, (L - 1, B, C, T), dtype=jnp.float32)

    all_z, all_mean, all_std = generative_network_forward(final_d, d, params, k_samp)
    jax.block_until_ready((all_z, all_mean, all_std))

    assert all_z.shape == (L, B, T, C)
    assert all_mean.shape == (L, B, T, C)
    assert all_std.shape == (L, B, T, C)
    assert bool(jnp.all(all_std >= 0.001)) and bool(jnp.all(all_std <= 5.0))
    assert bool(jnp.all(jnp.isfinite(all_z)))
    print("KERNEL_OK")
</pallas_src>

<mosaic_0001>
module attributes {stable_mosaic.version = 11 : i64} {
  func.func @_fused_stack_kernel(%arg0: i32, %arg1: memref<1x16x32xf32, #tpu.memory_space<vmem>>, %arg2: memref<1x16x32xf32, #tpu.memory_space<vmem>>, %arg3: memref<1x32x32xf32, #tpu.memory_space<vmem>>, %arg4: memref<1x1x32xf32, #tpu.memory_space<vmem>>, %arg5: memref<1x32x32xf32, #tpu.memory_space<vmem>>, %arg6: memref<1x1x32xf32, #tpu.memory_space<vmem>>, %arg7: memref<1x32x64xf32, #tpu.memory_space<vmem>>, %arg8: memref<1x1x64xf32, #tpu.memory_space<vmem>>, %arg9: memref<1x16x96xf32, #tpu.memory_space<vmem>>, %arg10: memref<16x32xf32, #tpu.memory_space<vmem>>, %arg11: memref<16x32xf32, #tpu.memory_space<vmem>>) attributes {dimension_semantics = [#tpu.dimension_semantics<arbitrary>], iteration_bounds = array<i64: 3>, scalar_prefetch = 0 : i64, scratch_operands = 2 : i64, tpu.core_type = #tpu.core_type<tc>, window_params = [{transform_indices = @transform_0, window_bounds = array<i64: 1, 16, 32>}, {transform_indices = @transform_1, window_bounds = array<i64: 1, 16, 32>}, {transform_indices = @transform_2, window_bounds = array<i64: 1, 32, 32>}, {transform_indices = @transform_3, window_bounds = array<i64: 1, 1, 32>}, {transform_indices = @transform_4, window_bounds = array<i64: 1, 32, 32>}, {transform_indices = @transform_5, window_bounds = array<i64: 1, 1, 32>}, {transform_indices = @transform_6, window_bounds = array<i64: 1, 32, 64>}, {transform_indices = @transform_7, window_bounds = array<i64: 1, 1, 64>}, {transform_indices = @transform_8, window_bounds = array<i64: 1, 16, 96>}]} {
    %c0 = arith.constant 0 : index
    %c0_0 = arith.constant 0 : index
    %c0_1 = arith.constant 0 : index
    %0 = vector.load %arg1[%c0, %c0_0, %c0_1] : memref<1x16x32xf32, #tpu.memory_space<vmem>>, vector<1x16x32xf32>
    %1 = vector.shape_cast %0 : vector<1x16x32xf32> to vector<16x32xf32>
    %c0_2 = arith.constant 0 : index
    %c0_3 = arith.constant 0 : index
    %c0_4 = arith.constant 0 : index
    %2 = vector.load %arg3[%c0_2, %c0_3, %c0_4] : memref<1x32x32xf32, #tpu.memory_space<vmem>>, vector<1x32x32xf32>
    %3 = vector.shape_cast %2 : vector<1x32x32xf32> to vector<32x32xf32>
    %cst = arith.constant dense<0.000000e+00> : vector<16x32xf32>
    %4 = tpu.matmul %1, %3, %cst {dimension_numbers = #tpu.dot_dimension_numbers<[1], [0], [0], [1], [0, 0, 1, 1], [], []>} : vector<16x32xf32>, vector<32x32xf32>, vector<16x32xf32> -> vector<16x32xf32>
    %c0_5 = arith.constant 0 : index
    %c0_6 = arith.constant 0 : index
    %c0_7 = arith.constant 0 : index
    %5 = vector.load %arg4[%c0_5, %c0_6, %c0_7] : memref<1x1x32xf32, #tpu.memory_space<vmem>>, vector<1x1x32xf32>
    %6 = vector.shape_cast %5 : vector<1x1x32xf32> to vector<1x32xf32>
    %7 = vector.broadcast %6 : vector<1x32xf32> to vector<16x32xf32>
    %8 = arith.addf %4, %7 : vector<16x32xf32>
    %cst_8 = arith.constant 0.000000e+00 : f32
    %9 = vector.broadcast %cst_8 : f32 to vector<16x32xf32>
    %10 = arith.maximumf %8, %9 : vector<16x32xf32>
    %c0_9 = arith.constant 0 : index
    %c0_10 = arith.constant 0 : index
    %11 = vector.load %arg11[%c0_9, %c0_10] : memref<16x32xf32, #tpu.memory_space<vmem>>, vector<16x32xf32>
    tpu.vector_store %arg11[%c0_9, %c0_10], %10 {strides = array<i32>} : memref<16x32xf32, #tpu.memory_space<vmem>>, vector<16x32xf32>,
    %c0_i32 = arith.constant 0 : i32
    %12 = arith.cmpi sgt, %arg0, %c0_i32 : i32
    %13 = arith.extui %12 : i1 to i32
    %c0_i32_11 = arith.constant 0 : i32
    %14 = arith.cmpi ne, %13, %c0_i32_11 : i32
    scf.if %14 {
      %c0_33 = arith.constant 0 : index
      %c0_34 = arith.constant 0 : index
      %46 = vector.load %arg11[%c0_33, %c0_34] : memref<16x32xf32, #tpu.memory_space<vmem>>, vector<16x32xf32>
      %c0_35 = arith.constant 0 : index
      %c0_36 = arith.constant 0 : index
      %47 = vector.load %arg10[%c0_35, %c0_36] : memref<16x32xf32, #tpu.memory_space<vmem>>, vector<16x32xf32>
      %c0_37 = arith.constant 0 : index
      %c0_38 = arith.constant 0 : index
      %c0_39 = arith.constant 0 : index
      %48 = vector.load %arg5[%c0_37, %c0_38, %c0_39] : memref<1x32x32xf32, #tpu.memory_space<vmem>>, vector<1x32x32xf32>
      %49 = vector.shape_cast %48 : vector<1x32x32xf32> to vector<32x32xf32>
      %cst_40 = arith.constant dense<0.000000e+00> : vector<16x32xf32>
      %50 = tpu.matmul %47, %49, %cst_40 {dimension_numbers = #tpu.dot_dimension_numbers<[1], [0], [0], [1], [0, 0, 1, 1], [], []>} : vector<16x32xf32>, vector<32x32xf32>, vector<16x32xf32> -> vector<16x32xf32>
      %c0_41 = arith.constant 0 : index
      %c0_42 = arith.constant 0 : index
      %c0_43 = arith.constant 0 : index
      %51 = vector.load %arg6[%c0_41, %c0_42, %c0_43] : memref<1x1x32xf32, #tpu.memory_space<vmem>>, vector<1x1x32xf32>
      %52 = vector.shape_cast %51 : vector<1x1x32xf32> to vector<1x32xf32>
      %53 = vector.broadcast %52 : vector<1x32xf32> to vector<16x32xf32>
      %54 = arith.addf %50, %53 : vector<16x32xf32>
      %cst_44 = arith.constant 0.000000e+00 : f32
      %55 = vector.broadcast %cst_44 : f32 to vector<16x32xf32>
      %56 = arith.maximumf %54, %55 : vector<16x32xf32>
      %57 = arith.addf %46, %56 : vector<16x32xf32>
      %c0_45 = arith.constant 0 : index
      %c0_46 = arith.constant 0 : index
      %58 = vector.load %arg11[%c0_45, %c0_46] : memref<16x32xf32, #tpu.memory_space<vmem>>, vector<16x32xf32>
      tpu.vector_store %arg11[%c0_45, %c0_46], %57 {strides = array<i32>} : memref<16x32xf32, #tpu.memory_space<vmem>>, vector<16x32xf32>,
    } else {
    }
    %c0_12 = arith.constant 0 : index
    %c0_13 = arith.constant 0 : index
    %15 = vector.load %arg11[%c0_12, %c0_13] : memref<16x32xf32, #tpu.memory_space<vmem>>, vector<16x32xf32>
    %c0_14 = arith.constant 0 : index
    %c0_15 = arith.constant 0 : index
    %c0_16 = arith.constant 0 : index
    %16 = vector.load %arg7[%c0_14, %c0_15, %c0_16] : memref<1x32x64xf32, #tpu.memory_space<vmem>>, vector<1x32x64xf32>
    %17 = vector.shape_cast %16 : vector<1x32x64xf32> to vector<32x64xf32>
    %cst_17 = arith.constant dense<0.000000e+00> : vector<16x64xf32>
    %18 = tpu.matmul %15, %17, %cst_17 {dimension_numbers = #tpu.dot_dimension_numbers<[1], [0], [0], [1], [0, 0, 1, 1], [], []>} : vector<16x32xf32>, vector<32x64xf32>, vector<16x64xf32> -> vector<16x64xf32>
    %c0_18 = arith.constant 0 : index
    %c0_19 = arith.constant 0 : index
    %c0_20 = arith.constant 0 : index
    %19 = vector.load %arg8[%c0_18, %c0_19, %c0_20] : memref<1x1x64xf32, #tpu.memory_space<vmem>>, vector<1x1x64xf32>
    %20 = vector.shape_cast %19 : vector<1x1x64xf32> to vector<1x64xf32>
    %21 = vector.broadcast %20 : vector<1x64xf32> to vector<16x64xf32>
    %22 = arith.addf %18, %21 : vector<16x64xf32>
    %23 = vector.extract_strided_slice %22 {offsets = [0, 0], sizes = [16, 32], strides = [1, 1]} : vector<16x64xf32> to vector<16x32xf32>
    %24 = vector.extract_strided_slice %22 {offsets = [0, 32], sizes = [16, 32], strides = [1, 1]} : vector<16x64xf32> to vector<16x32xf32>
    %cst_21 = arith.constant 0.000000e+00 : f32
    %25 = vector.broadcast %cst_21 : f32 to vector<16x32xf32>
    %26 = arith.maximumf %24, %25 : vector<16x32xf32>
    %27 = math.absf %24 : vector<16x32xf32>
    %cst_22 = arith.constant 0.000000e+00 : f32
    %28 = vector.broadcast %cst_22 : f32 to vector<16x32xf32>
    %29 = arith.subf %28, %27 : vector<16x32xf32>
    %30 = math.exp %29 : vector<16x32xf32>
    %31 = math.log1p %30 : vector<16x32xf32>
    %32 = arith.addf %26, %31 : vector<16x32xf32>
    %cst_23 = arith.constant 1.000000e-03 : f32
    %cst_24 = arith.constant 5.000000e+00 : f32
    %33 = vector.broadcast %cst_23 : f32 to vector<16x32xf32>
    %34 = arith.maximumf %33, %32 : vector<16x32xf32>
    %35 = vector.broadcast %cst_24 : f32 to vector<16x32xf32>
    %36 = arith.minimumf %35, %34 : vector<16x32xf32>
    %c0_25 = arith.constant 0 : index
    %c0_26 = arith.constant 0 : index
    %c0_27 = arith.constant 0 : index
    %37 = vector.load %arg2[%c0_25, %c0_26, %c0_27] : memref<1x16x32xf32, #tpu.memory_space<vmem>>, vector<1x16x32xf32>
    %38 = vector.shape_cast %37 : vector<1x16x32xf32> to vector<16x32xf32>
    %39 = arith.mulf %38, %36 : vector<16x32xf32>
    %40 = arith.addf %39, %23 : vector<16x32xf32>
    %c0_28 = arith.constant 0 : index
    %c0_29 = arith.constant 0 : index
    %41 = vector.load %arg10[%c0_28, %c0_29] : memref<16x32xf32, #tpu.memory_space<vmem>>, vector<16x32xf32>
    tpu.vector_store %arg10[%c0_28, %c0_29], %40 {strides = array<i32>} : memref<16x32xf32, #tpu.memory_space<vmem>>, vector<16x32xf32>,
    %42 = tpu.concatenate %40, %23, %36 in 1 : vector<16x32xf32>, vector<16x32xf32>, vector<16x32xf32> -> vector<16x96xf32>
    %c0_30 = arith.constant 0 : index
    %c0_31 = arith.constant 0 : index
    %c0_32 = arith.constant 0 : index
    %43 = vector.load %arg9[%c0_30, %c0_31, %c0_32] : memref<1x16x96xf32, #tpu.memory_space<vmem>>, vector<1x16x96xf32>
    %44 = vector.shape_cast %43 : vector<1x16x96xf32> to vector<16x96xf32>
    %45 = vector.shape_cast %42 : vector<16x96xf32> to vector<1x16x96xf32>
    tpu.vector_store %arg9[%c0_30, %c0_31, %c0_32], %45 {strides = array<i32>} : memref<1x16x96xf32, #tpu.memory_space<vmem>>, vector<1x16x96xf32>,
    return
  }
  func.func @transform_0(%arg0: i32) -> (i32, i32, i32) {
    %c0_i32 = arith.constant 0 : i32
    %c0_i32_0 = arith.constant 0 : i32
    %c0_i32_1 = arith.constant 0 : i32
    return %arg0, %c0_i32, %c0_i32_0 : i32, i32, i32
  }
  func.func @transform_1(%arg0: i32) -> (i32, i32, i32) {
    %c0_i32 = arith.constant 0 : i32
    %c0_i32_0 = arith.constant 0 : i32
    %c0_i32_1 = arith.constant 0 : i32
    return %arg0, %c0_i32, %c0_i32_0 : i32, i32, i32
  }
  func.func @transform_2(%arg0: i32) -> (i32, i32, i32) {
    %c0_i32 = arith.constant 0 : i32
    %c0_i32_0 = arith.constant 0 : i32
    %c0_i32_1 = arith.constant 0 : i32
    return %arg0, %c0_i32, %c0_i32_0 : i32, i32, i32
  }
  func.func @transform_3(%arg0: i32) -> (i32, i32, i32) {
    %c0_i32 = arith.constant 0 : i32
    %c0_i32_0 = arith.constant 0 : i32
    %c0_i32_1 = arith.constant 0 : i32
    return %arg0, %c0_i32, %c0_i32_0 : i32, i32, i32
  }
  func.func @transform_4(%arg0: i32) -> (i32, i32, i32) {
    %c0_i32 = arith.constant 0 : i32
    %c0_i32_0 = arith.constant 0 : i32
    %c0_i32_1 = arith.constant 0 : i32
    return %arg0, %c0_i32, %c0_i32_0 : i32, i32, i32
  }
  func.func @transform_5(%arg0: i32) -> (i32, i32, i32) {
    %c0_i32 = arith.constant 0 : i32
    %c0_i32_0 = arith.constant 0 : i32
    %c0_i32_1 = arith.constant 0 : i32
    return %arg0, %c0_i32, %c0_i32_0 : i32, i32, i32
  }
  func.func @transform_6(%arg0: i32) -> (i32, i32, i32) {
    %c0_i32 = arith.constant 0 : i32
    %c0_i32_0 = arith.constant 0 : i32
    %c0_i32_1 = arith.constant 0 : i32
    return %arg0, %c0_i32, %c0_i32_0 : i32, i32, i32
  }
  func.func @transform_7(%arg0: i32) -> (i32, i32, i32) {
    %c0_i32 = arith.constant 0 : i32
    %c0_i32_0 = arith.constant 0 : i32
    %c0_i32_1 = arith.constant 0 : i32
    return %arg0, %c0_i32, %c0_i32_0 : i32, i32, i32
  }
  func.func @transform_8(%arg0: i32) -> (i32, i32, i32) {
    %c0_i32 = arith.constant 0 : i32
    %c0_i32_0 = arith.constant 0 : i32
    %c0_i32_1 = arith.constant 0 : i32
    return %arg0, %c0_i32, %c0_i32_0 : i32, i32, i32
  }
}

</mosaic_0001>

<bundles_post_ra>
// kernel: generative_network_forward.1
= control target key start
LH: loop header
LB: loop body
LE: loop exit
PB: predicated region body
PF: predicated region fallthrough
CT: control target
= control target key end

     0   :  { %s1673_s0 = inlined_call_operand.vmem [shape: f32[3,16,32], index: 0, kind: input, shape index: {}]   ;;  %s1674_s1 = inlined_call_operand.vmem [shape: f32[3,16,32], index: 1, kind: input, shape index: {}]   ;;  %s1675_s2 = inlined_call_operand.vmem [shape: f32[3,32,32], index: 2, kind: input, shape index: {}]   ;;  %s1676_s3 = inlined_call_operand.hbm [shape: f32[3,1,32], index: 3, kind: input, shape index: {}]   ;;  %s1677_s4 = inlined_call_operand.hbm [shape: f32[3,32,32], index: 4, kind: input, shape index: {}]   ;;  %s1678_s5 = inlined_call_operand.hbm [shape: f32[3,1,32], index: 5, kind: input, shape index: {}]   ;;  %s1679_s6 = inlined_call_operand.vmem [shape: f32[3,32,64], index: 6, kind: input, shape index: {}]   ;;  %s1680_s7 = inlined_call_operand.hbm [shape: f32[3,1,64], index: 7, kind: input, shape index: {}]   ;;  %s1681_s8 = inlined_call_operand.vmem [shape: f32[3,16,96], index: 8, kind: output, shape index: {}]  }
   0x1   :  { %1684 = sst [smem:[#allocation16_spill]] %s1676_s3 }
   0x2   :  { %1685 = sst [smem:[#allocation17_spill]] %s1677_s4 }
   0x3   :  { %13 = vsyncpa [#allocation5], 0 }
   0x4   :  { %15 = vsyncpa [#allocation5 + $0x1], 0 }
   0x5   :  { %16 = vsyncpa [#allocation7], 0 }
   0x6   :  { %18 = vsyncpa [#allocation7 + $0x1], 0 }
   0x7   :  { %19 = vsyncpa [#allocation10], 0 }
   0x8   :  { %21 = vsyncpa [#allocation10 + $0x1], 0  ;;  %s1413_s27 = smov 0   ;;  %s1415_s28 = smov 0  }
   0x9   :  { %s1417_s29 = smov 0   ;;  %s1419_s30 = smov 0  }
   0xa LB: > { %1686 = sst [smem:[#allocation14_spill]] %s1354_s29  ;;  %s1432_s9 = sadd.s32 4294967295, %s1358_s30   ;;  %s1358_s30 = sphi %s1419_s30, %s1700_s30   ;;  %s1354_s29 = sphi %s1417_s29, %s1697_s29   ;;  %s1350_s28 = sphi %s1415_s28, %s1699_s28   ;;  %s1346_s27 = sphi %s1413_s27, %s1698_s27  }
   0xb   : > { %s1435_s10 = sadd.s32 1, %s1358_s30   ;;  %s112_s12 = sadd.s32 1, %s1354_s29 }
   0xc   : > { %s109_s11 = ssub.s32 %s1358_s30, %s1435_s10  ;;  %p119_p1 = scmp.ne.s32.totalorder %s1354_s29, %s1350_s28 }
   0xd   : > { %p110_p0 = scmp.eq.s32.totalorder %s109_s11, 0  ;;  %p120_p2 = scmp.eq.s32.totalorder %s1358_s30, 0 }
   0xe   : > { %p125_p3 = scmp.ne.s32.totalorder %s1350_s28, %s1346_s27  ;;  %p126_p5 = scmp.eq.s32.totalorder %s1432_s9, 0 }
   0xf   : > { %s1445_s13 = scalar_select %p110_p0, %s1354_s29, %s112_s12  }
  0x10   : > { %p121_p4 = por %p120_p2, %p119_p1  ;;  %p1159_p6 = scmp.lt.s32.totalorder %s1358_s30, 3 }
  0x11   : > { %1687 = sst [smem:[#allocation15_spill]] %s1445_s13  ;;  %p1449_p7 = por %p126_p5, %p125_p3 }
  0x12   : > { %s1454_s15 = sand.u32 1, %s1354_s29   ;;  %p1456_p8 = pnand %p1159_p6, %p121_p4 }
  0x13   : > { %s1688_s14 = scalar_select %p1449_p7, 1, 0 }
  0x14   : > { %s320_s17 = sand.u32 1, %s1358_s30   ;;  %s1052_s18 = sshll.u32 %s1454_s15, 5 }
  0x15   : > { %s1081_s19 = sshll.u32 %s1358_s30, 9  ;;  %s324_s20 = scalar_lea.vmem [#allocation6], %s1052_s18 }
  0x16   : > { %s331_s21 = sshll.u32 %s324_s20, 4  ;;  %s1690_s4 = sld [smem:[#allocation17_spill]]  ;;  %s1468_s21 = int_to_ptr.vmem [resolvable:$true] %s331_s21 }
  0x17   : > { %s1470_s25 = scalar_lea.sflag [#allocation7], %s320_s17  ;;  %p1476_p10 = pneg %p1456_p8 }
  0x1c   : > { %s1466_s24 = scalar_lea.hbm %s1690_s4, %s1081_s19  ;;  %s1209_s18 = scalar_lea.hbm %s1690_s4, 1536 }
  0x1d   : > { %s1204_s26 = scalar_lea.hbm %s1466_s24, 512  ;;  %p1210_p13 = scmp.lt.s32.totalorder %s1466_s24, %s1690_s4 }
  0x1e   : > { %p1205_p9 = scmp.ne.s32.totalorder %s1466_s24, %s1204_s26  ;;  %p1211_p0 = scmp.lt.s32.totalorder %s1209_s18, %s1204_s26 }
  0x20   : > { %p1207_p11 = pnand %p1476_p10, %p1205_p9  ;;  %p1212_p1 = por %p1211_p0, %p1210_p13 }
  0x22   : > { %p1208_p12 = pneg %p1207_p11 }
  0x24   : > { %p1213_p2 = pnand %p1212_p1, %p1208_p12 }
  0x26   : > { %1216 = shalt.err (!%p1213_p2)
}
  0x27   : > { %s1217_s17 = scalar_lea.vmem %s1468_s21, 512  ;;  %s1360_s22 = smov [#allocation6]  }
  0x28   : > { %p1218_p3 = scmp.ne.s32.totalorder %s1468_s21, %s1217_s17  ;;  %s1222_s23 = sshll.u32 %s1360_s22, 4  ;;  %s1223_s23 = int_to_ptr.vmem [resolvable:$false] %s1222_s23 }
  0x29   : > { %s1224_s11 = scalar_lea.vmem %s1223_s23, 1024  ;;  %p1225_p6 = scmp.lt.s32.totalorder %s1468_s21, %s1223_s23 }
  0x2a   : > { %p1220_p4 = pnand %p1218_p3, %p1476_p10  ;;  %p1226_p9 = scmp.lt.s32.totalorder %s1224_s11, %s1217_s17 }
  0x2c   : > { %p1221_p5 = pneg %p1220_p4  ;;  %p1227_p11 = por %p1226_p9, %p1225_p6 }
  0x2e   : > { %p1228_p7 = pnand %p1227_p11, %p1221_p5 }
  0x30   : > { %1231 = shalt.err (!%p1228_p7)
}
  0x31   : > { %s1361_s26 = smov 128   ;;  %s1362_s12 = smov 8  }
  0x32   : > { %1152 = dma.hbm_to_vmem [thread:$0]  (!%p1456_p8), %s1466_s24, 512, %s1468_s21, %s1470_s25, %s1361_s26, %s1361_s26, %s1362_s12  }
  0x33   : > { %p1057_p12 = scmp.ge.s32.totalorder %s1358_s30, 1  ;;  %p381_p13 = scmp.lt.s32.totalorder %s1358_s30, 4 }
  0x34   : > { %s1506_s19 = sshll.u32 %s1358_s30, 4  ;;  %s1693_s3 = sld [smem:[#allocation16_spill]] }
  0x35   : > { %p1501_p0 = pnand %p1057_p12, %p381_p13  ;;  %s306_s23 = scalar_lea.vmem [#allocation4], %s1454_s15 }
  0x36   : > { %s313_s11 = sshll.u32 %s306_s23, 4  ;;  %s304_s21 = scalar_lea.sflag [#allocation5], %s1454_s15  ;;  %s314_s11 = int_to_ptr.vmem [resolvable:$true] %s313_s11 }
  0x37   : > { %s1692_s18 = scalar_select %p1501_p0, 1, 0 }
  0x3a   : > { %s1512_s22 = scalar_lea.hbm %s1693_s3, %s1506_s19  ;;  %s1237_s12 = scalar_lea.hbm %s1693_s3, 48 }
  0x3b   : > { %s1232_s24 = scalar_lea.hbm %s1512_s22, 16  ;;  %p1238_p3 = scmp.lt.s32.totalorder %s1512_s22, %s1693_s3 }
  0x3c   : > { %p1233_p7 = scmp.ne.s32.totalorder %s1512_s22, %s1232_s24  ;;  %p1239_p4 = scmp.lt.s32.totalorder %s1237_s12, %s1232_s24 }
  0x3e   : > { %p1235_p1 = pnand %p1233_p7, %p1476_p10  ;;  %p1240_p5 = por %p1239_p4, %p1238_p3 }
  0x40   : > { %p1236_p2 = pneg %p1235_p1 }
  0x42   : > { %p1241_p6 = pnand %p1240_p5, %p1236_p2 }
  0x44   : > { %1244 = shalt.err (!%p1241_p6)
}
  0x45   : > { %s1245_s17 = scalar_lea.vmem %s314_s11, 16  ;;  %s1363_s23 = smov [#allocation4]  }
  0x46   : > { %p1246_p9 = scmp.ne.s32.totalorder %s314_s11, %s1245_s17  ;;  %s1250_s13 = sshll.u32 %s1363_s23, 4  ;;  %s1251_s13 = int_to_ptr.vmem [resolvable:$false] %s1250_s13 }
  0x47   : > { %s1252_s29 = scalar_lea.vmem %s1251_s13, 32  ;;  %p1253_p13 = scmp.lt.s32.totalorder %s314_s11, %s1251_s13 }
  0x48   : > { %p1248_p11 = pnand %p1246_p9, %p1476_p10  ;;  %p1254_p7 = scmp.lt.s32.totalorder %s1252_s29, %s1245_s17 }
  0x4a   : > { %p1249_p12 = pneg %p1248_p11  ;;  %p1255_p1 = por %p1254_p7, %p1253_p13 }
  0x4c   : > { %p1256_p0 = pnand %p1255_p1, %p1249_p12 }
  0x4e   : > { %1259 = shalt.err (!%p1256_p0)
}
  0x4f   : > { %1149 = dma.hbm_to_vmem [thread:$0]  (!%p1456_p8), %s1512_s22, 16, %s314_s11, %s304_s21  }
  0x50   : > { %s349_s30 = scalar_lea.hbm %s1678_s5, %s1506_s19  ;;  %s344_s26 = scalar_lea.vmem [#allocation8], %s1454_s15 }
  0x51   : > { %s351_s12 = sshll.u32 %s344_s26, 4  ;;  %s1260_s20 = scalar_lea.hbm %s349_s30, 16  ;;  %s352_s12 = int_to_ptr.vmem [resolvable:$true] %s351_s12 }
  0x52   : > { %p1261_p2 = scmp.ne.s32.totalorder %s349_s30, %s1260_s20  ;;  %s1265_s17 = scalar_lea.hbm %s1678_s5, 48 }
  0x53   : > { %p1266_p0 = scmp.lt.s32.totalorder %s349_s30, %s1678_s5  ;;  %p1267_p5 = scmp.lt.s32.totalorder %s1265_s17, %s1260_s20 }
  0x54   : > { %p1263_p3 = pnand %p1261_p2, %p1476_p10 }
  0x55   : > { %p1268_p6 = por %p1267_p5, %p1266_p0 }
  0x56   : > { %p1264_p4 = pneg %p1263_p3 }
  0x58   : > { %p1269_p9 = pnand %p1268_p6, %p1264_p4 }
  0x5a   : > { %1272 = shalt.err (!%p1269_p9)
}
  0x5b   : > { %s1273_s22 = scalar_lea.vmem %s352_s12, 16  ;;  %s1364_s11 = smov [#allocation8]  }
  0x5c   : > { %p1274_p11 = scmp.ne.s32.totalorder %s352_s12, %s1273_s22  ;;  %s1278_s21 = sshll.u32 %s1364_s11, 4  ;;  %s1279_s21 = int_to_ptr.vmem [resolvable:$false] %s1278_s21 }
  0x5d   : > { %s1280_s4 = scalar_lea.vmem %s1279_s21, 32  ;;  %p1281_p7 = scmp.lt.s32.totalorder %s352_s12, %s1279_s21 }
  0x5e   : > { %p1276_p12 = pnand %p1274_p11, %p1476_p10  ;;  %p1282_p1 = scmp.lt.s32.totalorder %s1280_s4, %s1273_s22 }
  0x60   : > { %p1277_p13 = pneg %p1276_p12  ;;  %p1283_p2 = por %p1282_p1, %p1281_p7 }
  0x62   : > { %p1284_p3 = pnand %p1283_p2, %p1277_p13 }
  0x64   : > { %1287 = shalt.err (!%p1284_p3)
}
  0x65   : > { %1155 = dma.hbm_to_vmem [thread:$0]  (!%p1456_p8), %s349_s30, 16, %s352_s12, %s1470_s25  }
  0x66   : > { %s1554_s26 = scalar_lea.hbm %s1680_s7, %s1506_s19  ;;  %s369_s20 = scalar_lea.vmem [#allocation9], %s1454_s15 }
  0x67   : > { %s376_s29 = sshll.u32 %s369_s20, 4  ;;  %s367_s13 = scalar_lea.sflag [#allocation10], %s1454_s15  ;;  %s377_s29 = int_to_ptr.vmem [resolvable:$true] %s376_s29 }
  0x68   : > { %s1288_s17 = scalar_lea.hbm %s1554_s26, 16  ;;  %s1293_s25 = scalar_lea.hbm %s1680_s7, 48 }
  0x69   : > { %p1289_p4 = scmp.ne.s32.totalorder %s1554_s26, %s1288_s17  ;;  %p1294_p6 = scmp.lt.s32.totalorder %s1554_s26, %s1680_s7 }
  0x6a   : > { %p1295_p9 = scmp.lt.s32.totalorder %s1293_s25, %s1288_s17 }
  0x6b   : > { %p1291_p0 = pnand %p1289_p4, %p1476_p10 }
  0x6c   : > { %p1296_p11 = por %p1295_p9, %p1294_p6 }
  0x6d   : > { %p1292_p5 = pneg %p1291_p0 }
  0x6f   : > { %p1297_p12 = pnand %p1296_p11, %p1292_p5 }
  0x71   : > { %1300 = shalt.err (!%p1297_p12)
}
  0x72   : > { %s1301_s19 = scalar_lea.vmem %s377_s29, 16  ;;  %s1365_s15 = smov [#allocation9]  }
  0x73   : > { %p1302_p13 = scmp.ne.s32.totalorder %s377_s29, %s1301_s19  ;;  %s1306_s11 = sshll.u32 %s1365_s15, 4  ;;  %s1307_s11 = int_to_ptr.vmem [resolvable:$false] %s1306_s11 }
  0x74   : > { %s1308_s21 = scalar_lea.vmem %s1307_s11, 32  ;;  %p1309_p2 = scmp.lt.s32.totalorder %s377_s29, %s1307_s11 }
  0x75   : > { %p1304_p7 = pnand %p1302_p13, %p1476_p10  ;;  %p1310_p3 = scmp.lt.s32.totalorder %s1308_s21, %s1301_s19 }
  0x77   : > { %p1305_p1 = pneg %p1304_p7  ;;  %p1311_p4 = por %p1310_p3, %p1309_p2 }
  0x79   : > { %p1312_p0 = pnand %p1311_p4, %p1305_p1 }
  0x7b   : > { %1315 = shalt.err (!%p1312_p0)
}
  0x7c   : > { %1158 = dma.hbm_to_vmem [thread:$0]  (!%p1456_p8), %s1554_s26, 16, %s377_s29, %s367_s13  }
  0x7d   : > { %p1694_p5 = scmp.ne.s32.totalorder %s1692_s18, 0 }
  0x7e   : > { %s1577_s27 = sand.u32 (!%p1694_p5), 1, %s1350_s28   ;;  %p1695_p10 = scmp.ne.s32.totalorder (!%p1694_p5), %s1688_s14, 0 }
  0x7f   : > { %385 = sbr.rel (%p1694_p5) target bundleno = 942 (0x3ae), region = 52  ;;  %s388_s4 = scalar_lea.sflag (!%p1694_p5), [#allocation5], %s1577_s27 }
  0x80   : > { %s390_s3 = scalar_lea.vmem (!%p1694_p5), [#allocation4], %s1577_s27 }
  0x84   : > { %1333 = dma.done.wait (%p1695_p10), %s388_s4, 16  }
  0x85   : > { %1335 = vsyncadd (%p1695_p10), %s388_s4, 4294967280  ;;  %s395_s16 = sand.u32 1, %s1432_s9   ;;  %s1058_s24 = sshll.u32 %s1577_s27, 5 }
  0x86   : > { %s396_s18 = scalar_lea.sflag [#allocation7], %s395_s16  ;;  %s1587_s26 = scalar_lea.vmem [#allocation6], %s1058_s24 }
  0x87   : > { %1337 = dma.done.wait (%p1695_p10), %s396_s18, 528  }
  0x88   : > { %1339 = vsyncadd (%p1695_p10), %s396_s18, 4294966768  ;;  %s407_s20 = scalar_lea.vmem [#allocation8], %s1577_s27  ;;  %s413_s29 = scalar_lea.sflag [#allocation10], %s1577_s27 }
  0x89   : > { %s415_s13 = scalar_lea.vmem [#allocation9], %s1577_s27 }
  0x8a   : > { %1341 = dma.done.wait (%p1695_p10), %s413_s29, 16  }
  0x8b   : > { %1343 = vsyncadd (%p1695_p10), %s413_s29, 4294967280  ;;  %p480_p8 = scmp.lt.s32.totalorder %s1432_s9, 2  ;;  %vm518_vm0 = vcmask 261120   ;;  %v1069_v6 = vld [vmem:[%s390_s3] ss:$0 sm:$0xff]  ;;  %p1072_p6 = scmp.le.s32.totalorder %s1432_s9, 0 }
  0x8d   : > { %s481_s17 = scalar_select %p480_p8, %s1432_s9, 2 }
  0x8f   : > { %s1084_s23 = sshll.u32 %s481_s17, 5  ;;  %s1082_s22 = sshll.u32 %s481_s17, 4 }
  0x90   : > { %s494_s12 = scalar_lea.vmem %s1675_s2, %s1084_s23  ;;  %s1608_s11 = scalar_lea.vmem %s1679_s6, %s1084_s23 }
  0x91   : > { %s484_s14 = scalar_lea.vmem %s1673_s0, %s1082_s22  ;;  %s1616_s18 = scalar_lea.vmem %s1674_s1, %s1082_s22  ;;  %v510_v0 = vld [vmem:[%s494_s12 + $0x18] sm:$0xff]  ;;  %v509_v1 = vld [vmem:[%s494_s12 + $0x10] sm:$0xff]  ;;  %v508_v3 = vld [vmem:[%s494_s12 + $0x8] sm:$0xff] }
  0x92   : > { %s1621_s25 = scalar_lea.vmem %s1681_s8, %s1082_s22  ;;  %1105 = vmatprep.subr.mxu0 %v510_v0  ;;  %v505_v2 = vld [vmem:[%s484_s14] sm:$0xff]  ;;  %v506_v5 = vld [vmem:[%s484_s14 + $0x8] sm:$0xff] }
  0x93   : > { %1106 = vmatpush3.msra.mxu0 %v510_v0  ;;  %1113 = vmatprep.mubr.msk.f32.mxu0 %vm518_vm0, %v505_v2  ;;  %v507_v4 = vld [vmem:[%s494_s12] sm:$0xff] }
  0x94   : > { %1107 = vmatprep.subr.mxu0 %v509_v1 }
  0x95   : > { %1108 = vmatpush3.msra.mxu0 %v509_v1 }
  0x96   : > { %1109 = vmatprep.subr.mxu0 %v508_v3 }
  0x97   : > { %1110 = vmatpush3.msra.mxu0 %v508_v3 }
  0x98   : > { %1111 = vmatprep.subr.mxu0 %v507_v4 }
  0x99   : > { %1112 = vmatpush3.msra.mxu0 %v507_v4 }
  0x9a   : > { %1114 = vmatmul.mubr.msk.f32.vlgmr.msra.gmra.mxu0 %vm518_vm0, %v506_v5 }
 0x15a   : > { %v1115_v7 = vpop.f32.mrf.mxu0 }
 0x15b   : > { %v597_v8 = vadd.f32 %v1115_v7, %v1069_v6 }
 0x15c   : > { %v591_v9 = vpop.f32.mrf.mxu0 }
 0x15d   : > { %v601_v10 = vmax.f32 %v597_v8, 0.0  ;;  %v592_v11 = vadd.f32 %v1069_v6, %v591_v9  ;;  %607 = sbr.rel (%p1072_p6) target bundleno = 565 (0x235), region = 72 }
 0x15f   : > { %603 = vst.msk [vmem:[#allocation3 + $0x8] sm:$0xff] %vm518_vm0, %v601_v10  ;;  %v600_v12 = vmax.f32 %v592_v11, 0.0 }
 0x161   : > { %602 = vst.msk [vmem:[#allocation3] sm:$0xff] %vm518_vm0, %v600_v12 }
 0x162   : > { %v615_v13 = vld [vmem:[%s1587_s26 + $0x18] sm:$0xff]  ;;  %v614_v14 = vld [vmem:[%s1587_s26 + $0x10] sm:$0xff]  ;;  %v613_v16 = vld [vmem:[%s1587_s26 + $0x8] sm:$0xff] }
 0x163   : > { %1116 = vmatprep.subr.mxu0 %v615_v13  ;;  %v610_v15 = vld [vmem:[#allocation2] sm:$0xff]  ;;  %v611_v18 = vld [vmem:[#allocation2 + $0x8] sm:$0xff] }
 0x164   : > { %1117 = vmatpush3.msra.mxu0 %v615_v13  ;;  %1124 = vmatprep.mubr.msk.f32.mxu0 %vm518_vm0, %v610_v15  ;;  %v612_v17 = vld [vmem:[%s1587_s26] sm:$0xff]  ;;  %v1073_v19 = vld [vmem:[%s407_s20] ss:$0 sm:$0xff] }
 0x165   : > { %1118 = vmatprep.subr.mxu0 %v614_v14 }
 0x166   : > { %1119 = vmatpush3.msra.mxu0 %v614_v14  ;;  %v609_v22 = vld [vmem:[#allocation3 + $0x8] sm:$0xff] }
 0x167   : > { %1120 = vmatprep.subr.mxu0 %v613_v16 }
 0x168   : > { %1121 = vmatpush3.msra.mxu0 %v613_v16  ;;  %v608_v26 = vld [vmem:[#allocation3] sm:$0xff] }
 0x169   : > { %1122 = vmatprep.subr.mxu0 %v612_v17 }
 0x16a   : > { %1123 = vmatpush3.msra.mxu0 %v612_v17 }
 0x16b   : > { %1125 = vmatmul.mubr.msk.f32.vlgmr.msra.gmra.mxu0 %vm518_vm0, %v611_v18 }
 0x22b   : > { %v1126_v20 = vpop.f32.mrf.mxu0 }
 0x22c   : > { %v701_v21 = vadd.f32 %v1126_v20, %v1073_v19 }
 0x22d   : > { %v695_v23 = vpop.f32.mrf.mxu0 }
 0x22e   : > { %v705_v24 = vmax.f32 %v701_v21, 0.0  ;;  %v696_v25 = vadd.f32 %v1073_v19, %v695_v23 }
 0x230   : > { %v707_v27 = vadd.f32 %v705_v24, %v609_v22  ;;  %v704_v28 = vmax.f32 %v696_v25, 0.0 }
 0x232   : > { %709 = vst.msk [vmem:[#allocation3 + $0x8] sm:$0xff] %vm518_vm0, %v707_v27  ;;  %v706_v29 = vadd.f32 %v704_v28, %v608_v26 }
 0x234   : > { %708 = vst.msk [vmem:[#allocation3] sm:$0xff] %vm518_vm0, %v706_v29 }
 0x235 PF: > { %v715_v30 = vld [vmem:[%s1608_s11 + $0x18] sm:$0xff]  ;;  %v714_v31 = vld [vmem:[%s1608_s11 + $0x10] sm:$0xff]  ;;  %v713_v33 = vld [vmem:[%s1608_s11 + $0x8] sm:$0xff]  ;;  %s1366_s9 = smov 32   ;;  %s1367_s27 = smov 96   ;;  %vm870_vm3 = vcmask 523264  }
 0x236   : > { %1127 = vmatprep.subr.mxu0 %v715_v30  ;;  %v712_v34 = vld [vmem:[%s1608_s11] sm:$0xff]  ;;  %v839_v13 = vld [vmem:[%s1616_s18 + $0x8] sm:$0xff]  ;;  %vm873_vm4 = vcmask 785408  }
 0x237   : > { %1128 = vmatpush3.msra.mxu0 %v715_v30  ;;  %v1076_v36 = vld [vmem:[%s415_s13] ss:$0 sm:$0xff] }
 0x238   : > { %1129 = vmatprep.subr.mxu0 %v714_v31  ;;  %v838_v9 = vld [vmem:[%s1616_s18] sm:$0xff] }
 0x239   : > { %1130 = vmatpush3.msra.mxu0 %v714_v31  ;;  %v711_v35 = vld [vmem:[#allocation3 + $0x8] sm:$0xff] }
 0x23a   : > { %1131 = vmatprep.subr.mxu0 %v713_v33 }
 0x23b   : > { %v710_v32 = vld [vmem:[#allocation3] sm:$0xff]  ;;  %1132 = vmatpush3.msra.mxu0 %v713_v33 }
 0x23c   : > { %1135 = vmatprep.mubr.msk.f32.mxu0 %vm518_vm0, %v710_v32  ;;  %1133 = vmatprep.subr.mxu0 %v712_v34 }
 0x23d   : > { %1134 = vmatpush3.msra.mxu0 %v712_v34 }
 0x23e   : > { %1136 = vmatmul.mubr.msk.f32.vlgmr.msra.gmra.mxu0 %vm518_vm0, %v711_v35 }
 0x2fe   : > { %v1137_v37 = vpop.f32.mrf.mxu0 }
 0x2ff   : > { %v801_v38 = vadd.f32 %v1137_v37, %v1076_v36 }
 0x300   : > { %v795_v39 = vpop.f32.mrf.mxu0 }
 0x301   : > { %v807_v40 = vand.u32 2147483647, %v801_v38  ;;  %v796_v41 = vadd.f32 %v1076_v36, %v795_v39  ;;  %v805_v61 = vmax.f32 %v801_v38, 0.0 }
 0x303   : > { %v809_v42 = vsub.f32 0.0, %v807_v40  ;;  %v806_v43 = vand.u32 2147483647, %v796_v41  ;;  %856 = vrot.lane.b32.xlu1 %v796_v41, %s1366_s9  ;;  %v804_v2 = vmax.f32 %v796_v41, 0.0 }
 0x305   : > { %v812_v44 = vmul.f32 1.442695, %v809_v42  ;;  %v808_v45 = vsub.f32 0.0, %v806_v43 }
 0x307   : > { %1196 = vpow2.f32 %v812_v44  ;;  %v810_v46 = vmul.f32 1.442695, %v808_v45  ;;  %858 = vrot.lane.b32.xlu1 %v801_v38, %s1366_s9 }
 0x309   : > { %1198 = vpow2.f32 %v810_v46 }
 0x314   : > { %v1197_v47 = vpop.eup %1196 }
 0x315   : > { %v823_v48 = vadd.f32 1.0, %v1197_v47  ;;  %v826_v51 = vmul.f32 -0.5, %v1197_v47  ;;  %v829_v54 = vand.u32 2147483647, %v1197_v47 }
 0x316   : > { %v1199_v49 = vpop.eup %1198 }
 0x317   : > { %1200 = vlog2.f32 %v823_v48  ;;  %v814_v50 = vadd.f32 1.0, %v1199_v49  ;;  %v817_v52 = vmul.f32 -0.5, %v1199_v49  ;;  %v827_v53 = vadd.f32 1.0, %v826_v51 }
 0x318   : > { %v820_v57 = vand.u32 2147483647, %v1199_v49  ;;  %vm830_vm1 = vcmp.lt.f32.partialorder %v829_v54, 0.0004427343 }
 0x319   : > { %1202 = vlog2.f32 %v814_v50  ;;  %v818_v55 = vadd.f32 1.0, %v817_v52  ;;  %v828_v59 = vmul.f32 %v1197_v47, %v827_v53 }
 0x31a   : > { %vm821_vm2 = vcmp.lt.f32.partialorder %v820_v57, 0.0004427343 }
 0x31b   : > { %v819_v0 = vmul.f32 %v1199_v49, %v818_v55 }
 0x324   : > { %v1201_v56 = vpop.eup %1200 }
 0x325   : > { %v825_v58 = vmul.f32 0.6931472, %v1201_v56 }
 0x326   : > { %v1203_v60 = vpop.eup %1202 }
 0x327   : > { %v831_v62 = vsel %vm830_vm1, %v828_v59, %v825_v58  ;;  %v816_v63 = vmul.f32 0.6931472, %v1203_v60 }
 0x328   : > { %v833_v1 = vadd.f32 %v831_v62, %v805_v61 }
 0x329   : > { %v822_v3 = vsel %vm821_vm2, %v819_v0, %v816_v63 }
 0x32a   : > { %v835_v4 = vmax.f32 %v833_v1, 0.001  ;;  %v832_v5 = vadd.f32 %v822_v3, %v804_v2 }
 0x32c   : > { %v837_v6 = vmin.f32 %v835_v4, 5.0  ;;  %v834_v7 = vmax.f32 %v832_v5, 0.001 }
 0x32e   : > { %864 = vrot.lane.b32.xlu1 %v837_v6, %s1366_s9  ;;  %v836_v8 = vmin.f32 %v834_v7, 5.0 }
 0x330   : > { %842 = vrot.lane.b32.xlu0 %v836_v8, %s1367_s27 }
 0x334   : > { %844 = vrot.lane.b32.xlu0 %v837_v6, %s1367_s27 }
 0x338   : > { %862 = vrot.lane.b32.xlu0 %v836_v8, %s1366_s9 }
 0x375   : > { %v857_v10 = vpop.permute.xlu1 %856 }
 0x379   : > { %v859_v16 = vpop.permute.xlu1 %858 }
 0x3a0   : > { %v865_v21 = vpop.permute.xlu1 %864 }
 0x3a2   : > { %v843_v11 = vpop.permute.xlu0 %842 }
 0x3a3   : > { %v848_v12 = vmul.f32 %v843_v11, %v838_v9 }
 0x3a5   : > { %v850_v14 = vadd.f32 %v848_v12, %v796_v41 }
 0x3a6   : > { %v845_v15 = vpop.permute.xlu0 %844 }
 0x3a7   : > { %852 = vst.msk [vmem:[#allocation2] sm:$0xff] %vm518_vm0, %v850_v14  ;;  %v849_v17 = vmul.f32 %v845_v15, %v839_v13  ;;  %v868_v19 = vsel %vm518_vm0, %v850_v14, %v857_v10 }
 0x3a9   : > { %v851_v18 = vadd.f32 %v849_v17, %v801_v38 }
 0x3aa   : > { %v863_v20 = vpop.permute.xlu0 %862 }
 0x3ab   : > { %853 = vst.msk [vmem:[#allocation2 + $0x8] sm:$0xff] %vm518_vm0, %v851_v18  ;;  %v869_v22 = vsel %vm518_vm0, %v851_v18, %v859_v16  ;;  %v871_v23 = vsel %vm870_vm3, %v868_v19, %v863_v20 }
 0x3ac   : > { %v872_v24 = vsel %vm870_vm3, %v869_v22, %v865_v21  ;;  %874 = vst.msk [vmem:[%s1621_s25] sm:$0xff] %vm873_vm4, %v871_v23 }
 0x3ad   : > { %875 = vst.msk [vmem:[%s1621_s25 + $0x8] sm:$0xff] %vm873_vm4, %v872_v24 }
 0x3ae PF: > { %s1696_s3 = sld [smem:[#allocation14_spill]]  ;;  %p24_p9 = scmp.ge.s32.totalorder %s1435_s10, 5  }
 0x3af   : > { %s1697_s29 = sld [smem:[#allocation15_spill]]  ;;  %s1698_s27 = smov %s1350_s28 }
 0x3b0   : > { %s1700_s30 = smov %s1435_s10  ;;  %26 = sbr.rel (!%p24_p9) target bundleno = 10 (0xa), region = 145 }
 0x3b4   : > { %s1699_s28 = smov %s1696_s3 }
 0x3b5   :  { %897 = vsyncpa [#allocation5], 1 }
 0x3b6   :  { %899 = vsyncpa [#allocation5 + $0x1], 1 }
 0x3b7   :  { %900 = vsyncpa [#allocation7], 1 }
 0x3b8   :  { %902 = vsyncpa [#allocation7 + $0x1], 1 }
 0x3b9   :  { %903 = vsyncpa [#allocation10], 1 }
 0x3ba   :  { %905 = vsyncpa [#allocation10 + $0x1], 1 }

</bundles_post_ra>
